<compile_context>
chip_gen: v5e
topology: v5e:2x2
jax: 0.10.0
libtpu: 0.0.40
codegen_flags: <defaults>
</compile_context>

<pallas_src>
import jax
import jax.numpy as jnp
from jax.experimental import pallas as pl
from jax.experimental.pallas import tpu as pltpu

BN_EPS = 1e-5


# ---------------------------------------------------------------------------
# Fused kernel: [conv1x1 + foldedBN + ReLU] x L  ->  proj  ->  softmax  ->
#               soft-argmax, for BOTH towers and ALL batch elements in one step.
# ---------------------------------------------------------------------------
def _build_fused_kernel(num_layers, batch, hw, compute_dtype, newton_refine):
    def kernel(x_ref, *refs):
        n = 2 * num_layers
        layer_refs = refs[:n]          # (w0, b0, w1, b1, ...)
        proj_ref = refs[n]             # (2, 2C)           block-row projection
        coords_ref = refs[n + 1]       # (HW, 2) f32       [coord_x, coord_y] / img_sz
        o_ref = refs[n + 2]            # (2B, 2) f32       rows: [tl_b, br_b] per batch

        # Merge batch into the lane axis ONCE: (B, Cin, HW) -> (Cin, B*HW).
        # x arrives f32 from HBM; the compute-dtype cast happens here, in-kernel.
        h = jnp.concatenate(
            [x_ref[b] for b in range(batch)], axis=-1).astype(compute_dtype)

        # Stacked (layer 0) / block-diagonal (layer >= 1) tower weights:
        # one MXU matmul per layer covers both towers and all batch elements.
        for l in range(num_layers):
            w = layer_refs[2 * l][...].astype(compute_dtype)        # (2C, Cin|2C)
            bias = layer_refs[2 * l + 1][...]                       # (2C, 1) f32
            y = jnp.dot(w, h, preferred_element_type=jnp.float32)   # (2C, B*HW) f32
            # bias + ReLU epilogue in f32; cast only for the next MXU op.
            h = jnp.maximum(y + bias, 0.0).astype(compute_dtype)

        # Final 1-channel projection for both towers: (2, 2C) @ (2C, B*HW).
        score = jnp.dot(proj_ref[...].astype(compute_dtype), h,
                        preferred_element_type=jnp.float32)          # (2, B*HW)

        # Regroup to one softmax row per (batch, tower): rows = [tl_b, br_b] per b.
        s = jnp.concatenate(
            [score[:, b * hw:(b + 1) * hw] for b in range(batch)], axis=0)  # (2B, HW)

        m = jnp.max(s, axis=-1, keepdims=True)
        e = jnp.exp(s - m)                                            # (2B, HW) f32
        denom = jnp.sum(e, axis=-1, keepdims=True)                    # (2B, 1)
        inv = pl.reciprocal(denom, approx=True)                       # EUP slot
        if newton_refine:                                             # f32 check mode
            inv = inv * (2.0 - denom * inv)

        # Soft-argmax as a single tiny MXU matmul; 1/img_sz is folded into coords.
        xy = jnp.dot(e, coords_ref[...],
                     preferred_element_type=jnp.float32) * inv        # (2B, 2)
        o_ref[...] = xy

    return kernel


# ---------------------------------------------------------------------------
# Parameters (deterministic, synthetic) and one-time preprocessing
# ---------------------------------------------------------------------------
def init_params(key, inplanes, channel, stack_layers):
    params = {}
    for tower in ("tl", "br"):
        layers = []
        c_in = inplanes
        for _ in range(stack_layers):
            key, k1, k2, k3, k4, k5, k6 = jax.random.split(key, 7)
            w = jax.random.normal(k1, (channel, c_in), jnp.float32) * 0.1
            b = jax.random.normal(k2, (channel,), jnp.float32) * 0.1
            gamma = jax.random.uniform(k3, (channel,), jnp.float32, 0.5, 1.5)
            beta = jax.random.normal(k4, (channel,), jnp.float32) * 0.1
            mean = jax.random.normal(k5, (channel,), jnp.float32) * 0.1
            var = jax.random.uniform(k6, (channel,), jnp.float32, 0.5, 1.5)
            layers.append((w, b, gamma, beta, mean, var))
            c_in = channel
        key, k1, k2 = jax.random.split(key, 3)
        proj_w = jax.random.normal(k1, (1, c_in), jnp.float32) * 0.1
        proj_b = jax.random.normal(k2, (1,), jnp.float32) * 0.1
        params[tower] = {"layers": layers, "proj_w": proj_w, "proj_b": proj_b}
    return params


def _fold_bn(w, b, gamma, beta, mean, var):
    """Fold inference-mode BN into the 1x1 conv.  Returns (Cout, Cin) weight."""
    scale = gamma / jnp.sqrt(var + BN_EPS)           # (Cout,)
    w_folded = w * scale[:, None]                    # (Cout, Cin)
    b_folded = scale * (b - mean) + beta             # (Cout,)
    return w_folded, b_folded


def _coords(feat_sz, stride):
    idx = jnp.arange(feat_sz, dtype=jnp.float32) * stride
    coord_x = jnp.tile(idx, feat_sz)     # varies fastest along W (row-major view)
    coord_y = jnp.repeat(idx, feat_sz)   # varies along H
    return coord_x, coord_y


def prepare_ft_corner_params(params, feat_sz, stride, compute_dtype=jnp.bfloat16):
    """One-time (model-load) preprocessing: BN fold, tower fuse, casts, coords."""
    num_layers = len(params["tl"]["layers"])
    img_sz = float(feat_sz * stride)
    hw = feat_sz * feat_sz

    ws, bs = [], []
    for l in range(num_layers):
        w_tl, b_tl = _fold_bn(*params["tl"]["layers"][l])
        w_br, b_br = _fold_bn(*params["br"]["layers"][l])
        if l == 0:
            # Shared input: row-stack the two towers -> (2C, Cin).
            w = jnp.concatenate([w_tl, w_br], axis=0)
        else:
            # Block-diagonal (2C, 2C): keeps the towers independent in one matmul.
            top = jnp.concatenate([w_tl, jnp.zeros_like(w_tl)], axis=1)
            bot = jnp.concatenate([jnp.zeros_like(w_br), w_br], axis=1)
            w = jnp.concatenate([top, bot], axis=0)
        ws.append(w.astype(compute_dtype))
        bs.append(jnp.concatenate([b_tl, b_br], axis=0)[:, None]
                  .astype(jnp.float32))                                # (2C, 1)

    ptl, pbr = params["tl"]["proj_w"], params["br"]["proj_w"]          # (1, C) each
    proj = jnp.concatenate(
        [jnp.concatenate([ptl, jnp.zeros_like(ptl)], axis=1),
         jnp.concatenate([jnp.zeros_like(pbr), pbr], axis=1)], axis=0)  # (2, 2C)
    # NOTE: proj biases are dropped on purpose — softmax over HW cancels them.

    coord_x, coord_y = _coords(feat_sz, stride)
    coords = jnp.stack([coord_x, coord_y], axis=1) / img_sz            # (HW, 2) f32

    return {"ws": tuple(ws), "bs": tuple(bs),
            "proj_w": proj.astype(compute_dtype), "coords": coords,
            "num_layers": num_layers, "hw": hw, "compute_dtype": compute_dtype}


# ---------------------------------------------------------------------------
# Forward wrapper: one single-step pallas_call covers both towers end-to-end.
# ---------------------------------------------------------------------------
def ft_corner_predictor_forward(x_nchw, prep):
    bsz, cin, h, w = x_nchw.shape
    hw = prep["hw"]
    assert h * w == hw
    # NCHW -> (B, Cin, HW): free reshape; x stays f32 (cast happens in-kernel).
    x = x_nchw.reshape(bsz, cin, hw)

    ins = [x]
    in_specs = [pl.BlockSpec(x.shape, lambda i: (0, 0, 0))]
    for wl, bl in zip(prep["ws"], prep["bs"]):
        ins += [wl, bl]
        in_specs += [pl.BlockSpec(wl.shape, lambda i: (0, 0)),
                     pl.BlockSpec(bl.shape, lambda i: (0, 0))]
    ins += [prep["proj_w"], prep["coords"]]
    in_specs += [pl.BlockSpec(prep["proj_w"].shape, lambda i: (0, 0)),
                 pl.BlockSpec(prep["coords"].shape, lambda i: (0, 0))]

    newton = jnp.dtype(prep["compute_dtype"]) == jnp.dtype(jnp.float32)
    kernel = _build_fused_kernel(prep["num_layers"], bsz, hw,
                                 prep["compute_dtype"], newton_refine=bool(newton))

    out = pl.pallas_call(
        kernel,
        out_shape=jax.ShapeDtypeStruct((2 * bsz, 2), jnp.float32),
        grid=(1,),                                  # single fused step (both towers)
        in_specs=in_specs,
        out_specs=pl.BlockSpec((2 * bsz, 2), lambda i: (0, 0)),
        compiler_params=pltpu.CompilerParams(dimension_semantics=("arbitrary",)),
    )(*ins)

    # Rows are [tl_b, br_b] per batch, columns (x, y)  ==>  row-major (2B, 2) is
    # exactly (B, 4) = (x_tl, y_tl, x_br, y_br).  This reshape is a free bitcast.
    return out.reshape(bsz, 4)


# ---------------------------------------------------------------------------
# Pure-JAX reference (mirrors PyTorch NCHW semantics) for correctness check
# ---------------------------------------------------------------------------
def reference_forward(x_nchw, params, feat_sz, stride):
    bsz = x_nchw.shape[0]
    img_sz = feat_sz * stride
    hw = feat_sz * feat_sz
    coord_x, coord_y = _coords(feat_sz, stride)

    def tower(tp):
        h = x_nchw
        for (cw, cb, gamma, beta, mean, var) in tp["layers"]:
            y = jnp.einsum("oc,bchw->bohw", cw, h) + cb[None, :, None, None]
            scale = (gamma / jnp.sqrt(var + BN_EPS))[None, :, None, None]
            y = (y - mean[None, :, None, None]) * scale + beta[None, :, None, None]
            h = jnp.maximum(y, 0.0)
        s = jnp.einsum("oc,bchw->bohw", tp["proj_w"], h) + tp["proj_b"][None, :, None, None]
        s = s.reshape(bsz, hw)
        p = jax.nn.softmax(s, axis=1)
        ex = jnp.sum(coord_x[None, :] * p, axis=1)
        ey = jnp.sum(coord_y[None, :] * p, axis=1)
        return ex, ey

    ex_tl, ey_tl = tower(params["tl"])
    ex_br, ey_br = tower(params["br"])
    return jnp.stack([ex_tl, ey_tl, ex_br, ey_br], axis=1) / img_sz


if __name__ == "__main__":
    # Small shapes consistent with the module: B=2, inplanes=8, 8x8 feature map,
    # stride=16, 2 stacked FT_conv layers of width 32  (B*HW = 128 lanes exactly).
    B, inplanes, channel, feat_sz, stride, stack_layers = 2, 8, 32, 8, 16, 2

    key = jax.random.PRNGKey(0)
    key, kx = jax.random.split(key)
    x = jax.random.normal(kx, (B, inplanes, feat_sz, feat_sz), jnp.float32)
    params = init_params(key, inplanes, channel, stack_layers)

    ref = reference_forward(x, params, feat_sz, stride)

    # f32 MXU operands: tight structural check of the fused kernel.
    prep_f32 = prepare_ft_corner_params(params, feat_sz, stride, jnp.float32)
    out_f32 = jax.block_until_ready(ft_corner_predictor_forward(x, prep_f32))
    assert out_f32.shape == (B, 4), out_f32.shape
    assert jnp.allclose(out_f32, ref, atol=1e-3, rtol=1e-3), (out_f32, ref)

    # bf16 MXU operands (default perf mode), f32 accumulate / epilogue.
    prep_bf16 = prepare_ft_corner_params(params, feat_sz, stride, jnp.bfloat16)
    out_bf16 = jax.block_until_ready(ft_corner_predictor_forward(x, prep_bf16))
    assert out_bf16.shape == (B, 4), out_bf16.shape
    assert jnp.allclose(out_bf16, ref, atol=1e-2, rtol=1e-2), (out_bf16, ref)

    print("KERNEL_OK")
</pallas_src>

<mosaic_0001>
module attributes {stable_mosaic.version = 11 : i64} {
  func.func @kernel(%arg0: i32, %arg1: memref<2x8x64xf32, #tpu.memory_space<vmem>>, %arg2: memref<64x8xf32, #tpu.memory_space<vmem>>, %arg3: memref<64x1xf32, #tpu.memory_space<vmem>>, %arg4: memref<64x64xf32, #tpu.memory_space<vmem>>, %arg5: memref<64x1xf32, #tpu.memory_space<vmem>>, %arg6: memref<2x64xf32, #tpu.memory_space<vmem>>, %arg7: memref<64x2xf32, #tpu.memory_space<vmem>>, %arg8: memref<4x2xf32, #tpu.memory_space<vmem>>) attributes {dimension_semantics = [#tpu.dimension_semantics<arbitrary>], iteration_bounds = array<i64: 1>, scalar_prefetch = 0 : i64, scratch_operands = 0 : i64, tpu.core_type = #tpu.core_type<tc>, window_params = [{pipeline_mode = #tpu.pipeline_mode<synchronous>, transform_indices = @transform_0, window_bounds = array<i64: 2, 8, 64>}, {pipeline_mode = #tpu.pipeline_mode<synchronous>, transform_indices = @transform_1, window_bounds = array<i64: 64, 8>}, {pipeline_mode = #tpu.pipeline_mode<synchronous>, transform_indices = @transform_2, window_bounds = array<i64: 64, 1>}, {pipeline_mode = #tpu.pipeline_mode<synchronous>, transform_indices = @transform_3, window_bounds = array<i64: 64, 64>}, {pipeline_mode = #tpu.pipeline_mode<synchronous>, transform_indices = @transform_4, window_bounds = array<i64: 64, 1>}, {pipeline_mode = #tpu.pipeline_mode<synchronous>, transform_indices = @transform_5, window_bounds = array<i64: 2, 64>}, {pipeline_mode = #tpu.pipeline_mode<synchronous>, transform_indices = @transform_6, window_bounds = array<i64: 64, 2>}, {pipeline_mode = #tpu.pipeline_mode<synchronous>, transform_indices = @transform_7, window_bounds = array<i64: 4, 2>}]} {
    %c0 = arith.constant 0 : index
    %c0_0 = arith.constant 0 : index
    %c0_1 = arith.constant 0 : index
    %0 = vector.load %arg1[%c0, %c0_0, %c0_1] : memref<2x8x64xf32, #tpu.memory_space<vmem>>, vector<1x8x64xf32>
    %1 = vector.shape_cast %0 : vector<1x8x64xf32> to vector<8x64xf32>
    %c1 = arith.constant 1 : index
    %c0_2 = arith.constant 0 : index
    %c0_3 = arith.constant 0 : index
    %2 = vector.load %arg1[%c1, %c0_2, %c0_3] : memref<2x8x64xf32, #tpu.memory_space<vmem>>, vector<1x8x64xf32>
    %3 = vector.shape_cast %2 : vector<1x8x64xf32> to vector<8x64xf32>
    %4 = tpu.concatenate %1, %3 in 1 : vector<8x64xf32>, vector<8x64xf32> -> vector<8x128xf32>
    %c0_4 = arith.constant 0 : index
    %c0_5 = arith.constant 0 : index
    %5 = vector.load %arg2[%c0_4, %c0_5] : memref<64x8xf32, #tpu.memory_space<vmem>>, vector<64x8xf32>
    %c0_6 = arith.constant 0 : index
    %c0_7 = arith.constant 0 : index
    %6 = vector.load %arg3[%c0_6, %c0_7] : memref<64x1xf32, #tpu.memory_space<vmem>>, vector<64x1xf32>
    %cst = arith.constant dense<0.000000e+00> : vector<64x128xf32>
    %7 = tpu.matmul %5, %4, %cst {dimension_numbers = #tpu.dot_dimension_numbers<[1], [0], [0], [1], [0, 0, 1, 1], [], []>} : vector<64x8xf32>, vector<8x128xf32>, vector<64x128xf32> -> vector<64x128xf32>
    %8 = vector.broadcast %6 : vector<64x1xf32> to vector<64x128xf32>
    %9 = arith.addf %7, %8 : vector<64x128xf32>
    %cst_8 = arith.constant 0.000000e+00 : f32
    %10 = vector.broadcast %cst_8 : f32 to vector<64x128xf32>
    %11 = arith.maximumf %9, %10 : vector<64x128xf32>
    %c0_9 = arith.constant 0 : index
    %c0_10 = arith.constant 0 : index
    %12 = vector.load %arg4[%c0_9, %c0_10] : memref<64x64xf32, #tpu.memory_space<vmem>>, vector<64x64xf32>
    %c0_11 = arith.constant 0 : index
    %c0_12 = arith.constant 0 : index
    %13 = vector.load %arg5[%c0_11, %c0_12] : memref<64x1xf32, #tpu.memory_space<vmem>>, vector<64x1xf32>
    %cst_13 = arith.constant dense<0.000000e+00> : vector<64x128xf32>
    %14 = tpu.matmul %12, %11, %cst_13 {dimension_numbers = #tpu.dot_dimension_numbers<[1], [0], [0], [1], [0, 0, 1, 1], [], []>} : vector<64x64xf32>, vector<64x128xf32>, vector<64x128xf32> -> vector<64x128xf32>
    %15 = vector.broadcast %13 : vector<64x1xf32> to vector<64x128xf32>
    %16 = arith.addf %14, %15 : vector<64x128xf32>
    %cst_14 = arith.constant 0.000000e+00 : f32
    %17 = vector.broadcast %cst_14 : f32 to vector<64x128xf32>
    %18 = arith.maximumf %16, %17 : vector<64x128xf32>
    %c0_15 = arith.constant 0 : index
    %c0_16 = arith.constant 0 : index
    %19 = vector.load %arg6[%c0_15, %c0_16] : memref<2x64xf32, #tpu.memory_space<vmem>>, vector<2x64xf32>
    %cst_17 = arith.constant dense<0.000000e+00> : vector<2x128xf32>
    %20 = tpu.matmul %19, %18, %cst_17 {dimension_numbers = #tpu.dot_dimension_numbers<[1], [0], [0], [1], [0, 0, 1, 1], [], []>} : vector<2x64xf32>, vector<64x128xf32>, vector<2x128xf32> -> vector<2x128xf32>
    %21 = vector.extract_strided_slice %20 {offsets = [0, 0], sizes = [2, 64], strides = [1, 1]} : vector<2x128xf32> to vector<2x64xf32>
    %22 = vector.extract_strided_slice %20 {offsets = [0, 64], sizes = [2, 64], strides = [1, 1]} : vector<2x128xf32> to vector<2x64xf32>
    %23 = tpu.concatenate %21, %22 in 0 : vector<2x64xf32>, vector<2x64xf32> -> vector<4x64xf32>
    %cst_18 = arith.constant dense<0xFF800000> : vector<4xf32>
    %24 = vector.multi_reduction <maximumf>, %23, %cst_18 [1] : vector<4x64xf32> to vector<4xf32>
    %25 = vector.shape_cast %24 : vector<4xf32> to vector<4x1xf32>
    %26 = vector.broadcast %25 : vector<4x1xf32> to vector<4x64xf32>
    %27 = arith.subf %23, %26 : vector<4x64xf32>
    %28 = math.exp %27 : vector<4x64xf32>
    %cst_19 = arith.constant dense<0.000000e+00> : vector<4xf32>
    %29 = vector.multi_reduction <add>, %28, %cst_19 [1] : vector<4x64xf32> to vector<4xf32>
    %30 = vector.shape_cast %29 : vector<4xf32> to vector<4x1xf32>
    %31 = tpu.reciprocal %30 {approx = true} : vector<4x1xf32> -> vector<4x1xf32>
    %32 = arith.mulf %30, %31 : vector<4x1xf32>
    %cst_20 = arith.constant 2.000000e+00 : f32
    %33 = vector.broadcast %cst_20 : f32 to vector<4x1xf32>
    %34 = arith.subf %33, %32 : vector<4x1xf32>
    %35 = arith.mulf %31, %34 : vector<4x1xf32>
    %c0_21 = arith.constant 0 : index
    %c0_22 = arith.constant 0 : index
    %36 = vector.load %arg7[%c0_21, %c0_22] : memref<64x2xf32, #tpu.memory_space<vmem>>, vector<64x2xf32>
    %cst_23 = arith.constant dense<0.000000e+00> : vector<4x2xf32>
    %37 = tpu.matmul %28, %36, %cst_23 {dimension_numbers = #tpu.dot_dimension_numbers<[1], [0], [0], [1], [0, 0, 1, 1], [], []>} : vector<4x64xf32>, vector<64x2xf32>, vector<4x2xf32> -> vector<4x2xf32>
    %38 = vector.broadcast %35 : vector<4x1xf32> to vector<4x2xf32>
    %39 = arith.mulf %37, %38 : vector<4x2xf32>
    %c0_24 = arith.constant 0 : index
    %c0_25 = arith.constant 0 : index
    %40 = vector.load %arg8[%c0_24, %c0_25] : memref<4x2xf32, #tpu.memory_space<vmem>>, vector<4x2xf32>
    tpu.vector_store %arg8[%c0_24, %c0_25], %39 {strides = array<i32>} : memref<4x2xf32, #tpu.memory_space<vmem>>, vector<4x2xf32>,
    return
  }
  func.func @transform_0(%arg0: i32) -> (i32, i32, i32) {
    %c0_i32 = arith.constant 0 : i32
    %c0_i32_0 = arith.constant 0 : i32
    %c0_i32_1 = arith.constant 0 : i32
    %c0_i32_2 = arith.constant 0 : i32
    return %c0_i32, %c0_i32_0, %c0_i32_1 : i32, i32, i32
  }
  func.func @transform_1(%arg0: i32) -> (i32, i32) {
    %c0_i32 = arith.constant 0 : i32
    %c0_i32_0 = arith.constant 0 : i32
    %c0_i32_1 = arith.constant 0 : i32
    return %c0_i32, %c0_i32_0 : i32, i32
  }
  func.func @transform_2(%arg0: i32) -> (i32, i32) {
    %c0_i32 = arith.constant 0 : i32
    %c0_i32_0 = arith.constant 0 : i32
    %c0_i32_1 = arith.constant 0 : i32
    return %c0_i32, %c0_i32_0 : i32, i32
  }
  func.func @transform_3(%arg0: i32) -> (i32, i32) {
    %c0_i32 = arith.constant 0 : i32
    %c0_i32_0 = arith.constant 0 : i32
    %c0_i32_1 = arith.constant 0 : i32
    return %c0_i32, %c0_i32_0 : i32, i32
  }
  func.func @transform_4(%arg0: i32) -> (i32, i32) {
    %c0_i32 = arith.constant 0 : i32
    %c0_i32_0 = arith.constant 0 : i32
    %c0_i32_1 = arith.constant 0 : i32
    return %c0_i32, %c0_i32_0 : i32, i32
  }
  func.func @transform_5(%arg0: i32) -> (i32, i32) {
    %c0_i32 = arith.constant 0 : i32
    %c0_i32_0 = arith.constant 0 : i32
    %c0_i32_1 = arith.constant 0 : i32
    return %c0_i32, %c0_i32_0 : i32, i32
  }
  func.func @transform_6(%arg0: i32) -> (i32, i32) {
    %c0_i32 = arith.constant 0 : i32
    %c0_i32_0 = arith.constant 0 : i32
    %c0_i32_1 = arith.constant 0 : i32
    return %c0_i32, %c0_i32_0 : i32, i32
  }
  func.func @transform_7(%arg0: i32) -> (i32, i32) {
    %c0_i32 = arith.constant 0 : i32
    %c0_i32_0 = arith.constant 0 : i32
    %c0_i32_1 = arith.constant 0 : i32
    return %c0_i32, %c0_i32_0 : i32, i32
  }
}

</mosaic_0001>

<bundles_post_ra>
// kernel: tpu_custom_call.1
= control target key start
LH: loop header
LB: loop body
LE: loop exit
PB: predicated region body
PF: predicated region fallthrough
CT: control target
= control target key end

     0   :  { %s422_s26 = smov 64   ;;  %v423_v1 = vmov 0   ;;  %vm33_vm0 = vcmask 523264   ;;  %vm91_vm1 = vcmask 64512   ;;  %vm323_vm2 = vcmask 1041408   ;;  %s619_s0 = inlined_call_operand.vmem [shape: f32[2,8,64], index: 0, kind: input, shape index: {}]   ;;  %s620_s2 = inlined_call_operand.vmem [shape: f32[64,1], index: 2, kind: input, shape index: {}]   ;;  %s621_s4 = inlined_call_operand.vmem [shape: f32[64,1], index: 4, kind: input, shape index: {}]   ;;  %s622_s1 = inlined_call_operand.vmem [shape: f32[64,8], index: 1, kind: input, shape index: {}]   ;;  %s623_s3 = inlined_call_operand.vmem [shape: f32[64,64], index: 3, kind: input, shape index: {}]   ;;  %s624_s5 = inlined_call_operand.vmem [shape: f32[2,64], index: 5, kind: input, shape index: {}]   ;;  %s625_s6 = inlined_call_operand.vmem [shape: f32[64,2], index: 6, kind: input, shape index: {}]   ;;  %s626_s7 = inlined_call_operand.vmem [shape: f32[4,2], index: 7, kind: output, shape index: {}]  }
   0x1   :  { %v377_v0 = vld [vmem:[%s619_s0 + $0x8] sm:$0xff]  ;;  %416 = vset.pattern.permute.xlu1 %v423_v1  ;;  %v49_v2 = vld [vmem:[%s620_s2 + $0x30] sm:$0xff]  ;;  %415 = vset.pattern.permute.xlu0 %v423_v1  ;;  %v50_v3 = vld [vmem:[%s620_s2 + $0x38] sm:$0xff]  ;;  %vm325_vm3 = vcmask 519168   ;;  %vm371_vm4 = vcmask 11264  }
   0x2   :  { %30 = vrot.lane.b32.xlu0 %v377_v0, %s422_s26  ;;  %83 = vperm.xlu1 %416, %v49_v2   ;;  %v48_v4 = vld [vmem:[%s620_s2 + $0x28] sm:$0xff]  ;;  %v43_v5 = vld [vmem:[%s620_s2] sm:$0xff]  ;;  %v45_v6 = vld [vmem:[%s620_s2 + $0x10] sm:$0xff] }
   0x3   :  { %417 = vset.pattern.permute.xlu2 %v423_v1  ;;  %v180_v7 = vld [vmem:[%s621_s4 + $0x38] sm:$0xff]  ;;  %v47_v8 = vld [vmem:[%s620_s2 + $0x20] sm:$0xff]  ;;  %v41_v12 = vld [vmem:[%s622_s1 + $0x30] sm:$0xff] }
   0x4   :  { %73 = vperm.xlu2 %417, %v47_v8   ;;  %v26_v9 = vld [vmem:[%s619_s0] sm:$0xff]  ;;  %v46_v15 = vld [vmem:[%s620_s2 + $0x18] sm:$0xff]  ;;  %v178_v16 = vld [vmem:[%s621_s4 + $0x28] sm:$0xff] }
   0x5   :  { %v35_v11 = vld [vmem:[%s622_s1] sm:$0xff]  ;;  %v36_v17 = vld [vmem:[%s622_s1 + $0x8] sm:$0xff]  ;;  %v42_v18 = vld [vmem:[%s622_s1 + $0x38] sm:$0xff] }
   0x6   :  { %v177_v14 = vld [vmem:[%s621_s4 + $0x20] sm:$0xff]  ;;  %v174_v19 = vld [vmem:[%s621_s4 + $0x8] sm:$0xff]  ;;  %v175_v21 = vld [vmem:[%s621_s4 + $0x10] sm:$0xff] }
   0x7   :  { %v44_v20 = vld [vmem:[%s620_s2 + $0x8] sm:$0xff]  ;;  %v37_v22 = vld [vmem:[%s622_s1 + $0x10] sm:$0xff]  ;;  %v38_v24 = vld [vmem:[%s622_s1 + $0x18] sm:$0xff] }
   0x8   :  { %v179_v23 = vld [vmem:[%s621_s4 + $0x30] sm:$0xff]  ;;  %v176_v25 = vld [vmem:[%s621_s4 + $0x18] sm:$0xff]  ;;  %v39_v26 = vld [vmem:[%s622_s1 + $0x20] sm:$0xff] }
   0x9   :  { %v173_v27 = vld [vmem:[%s621_s4] sm:$0xff]  ;;  %v40_v28 = vld [vmem:[%s622_s1 + $0x28] sm:$0xff]  ;;  %v171_v63 = vld [vmem:[%s623_s3 + $0x30] sm:$0xff] }
   0xa   :  { %88 = vperm.xlu0 %415, %v50_v3   ;;  %78 = vperm.xlu1 %416, %v48_v4   ;;  %v165_v61 = vld [vmem:[%s623_s3] sm:$0xff]  ;;  %v166_v0 = vld [vmem:[%s623_s3 + $0x8] sm:$0xff]  ;;  %v172_v2 = vld [vmem:[%s623_s3 + $0x38] sm:$0xff] }
   0xb   :  { %v169_v62 = vld [vmem:[%s623_s3 + $0x20] sm:$0xff]  ;;  %v170_v1 = vld [vmem:[%s623_s3 + $0x28] sm:$0xff]  ;;  %v167_v3 = vld [vmem:[%s623_s3 + $0x10] sm:$0xff] }
   0xc   :  { %68 = vperm.xlu2 %417, %v46_v15   ;;  %v168_v4 = vld [vmem:[%s623_s3 + $0x18] sm:$0xff] }
  0x12   :  { %53 = vperm.xlu0 %415, %v43_v5   ;;  %63 = vperm.xlu1 %416, %v45_v6  }
  0x14   :  { %58 = vperm.xlu2 %417, %v44_v20  }
  0x1a   :  { %218 = vperm.xlu1 %416, %v180_v7   ;;  %208 = vperm.xlu0 %415, %v178_v16  }
  0x1c   :  { %213 = vperm.xlu2 %417, %v179_v23  }
  0x22   :  { %203 = vperm.xlu1 %416, %v177_v14   ;;  %193 = vperm.xlu0 %415, %v175_v21  }
  0x24   :  { %198 = vperm.xlu2 %417, %v176_v25  }
  0x2a   :  { %188 = vperm.xlu1 %416, %v174_v19  }
  0x2c   :  { %183 = vperm.xlu2 %417, %v173_v27  }
  0x5e   :  { %v74_v40 = vpop.permute.xlu2 %73 }
  0x66   :  { %v69_v44 = vpop.permute.xlu2 %68 }
  0x6e   :  { %v59_v51 = vpop.permute.xlu2 %58 }
  0x74   :  { %v31_v10 = vpop.permute.xlu0 %30  ;;  %v84_v32 = vpop.permute.xlu1 %83 }
  0x75   :  { %v34_v13 = vsel %vm33_vm0, %v26_v9, %v31_v10 }
  0x76   :  { %131 = vmatpush.msra.mxu0 %v34_v13  ;;  %396 = vmatpush.msra.mxu3 %v34_v13  ;;  %v214_v9 = vpop.permute.xlu2 %213 }
  0x77   :  { %378 = vmatmul.msk.f32.vlgmr.msra.gmra.mxu0 %vm91_vm1, %v35_v11  ;;  %384 = vmatmul.msk.f32.vlgmr.msra.gmra.mxu3 %vm91_vm1, %v41_v12 }
  0x7c   :  { %v89_v34 = vpop.permute.xlu0 %88  ;;  %v79_v43 = vpop.permute.xlu1 %78 }
  0x7f   :  { %379 = vmatmul.msk.f32.gmra.mxu0 %vm91_vm1, %v36_v17  ;;  %385 = vmatmul.msk.f32.gmra.mxu3 %vm91_vm1, %v42_v18  ;;  %v199_v18 = vpop.permute.xlu2 %198 }
  0x84   :  { %v64_v50 = vpop.permute.xlu1 %63  ;;  %v54_v54 = vpop.permute.xlu0 %53 }
  0x87   :  { %380 = vmatmul.msk.f32.gmra.mxu0 %vm91_vm1, %v37_v22 }
  0x8c   :  { %v219_v6 = vpop.permute.xlu1 %218  ;;  %v209_v11 = vpop.permute.xlu0 %208 }
  0x8f   :  { %381 = vmatmul.msk.f32.gmra.mxu0 %vm91_vm1, %v38_v24 }
  0x94   :  { %v204_v14 = vpop.permute.xlu1 %203  ;;  %v194_v24 = vpop.permute.xlu0 %193 }
  0x97   :  { %382 = vmatmul.msk.f32.gmra.mxu0 %vm91_vm1, %v39_v26 }
  0x9f   :  { %383 = vmatmul.msk.f32.gmra.mxu0 %vm91_vm1, %v40_v28 }
  0xf4   :  { %v133_v29 = vpop.f32.mrf.mxu0 }
  0xf5   :  { %v134_v57 = vadd.f32 %v133_v29, %v54_v54  ;;  %v189_v29 = vpop.permute.xlu1 %188 }
  0xf7   :  { %v157_v60 = vmax.f32 %v134_v57, 0.0 }
  0xfa   :  { %v151_v30 = vpop.f32.mrf.mxu3 }
  0xfb   :  { %v152_v33 = vadd.f32 %v151_v30, %v84_v32  ;;  %v184_v32 = vpop.permute.xlu2 %183 }
  0xfc   :  { %v136_v31 = vpop.f32.mrf.mxu0 }
  0xfd   :  { %v163_v38 = vmax.f32 %v152_v33, 0.0  ;;  %v137_v55 = vadd.f32 %v136_v31, %v59_v51 }
  0xff   :  { %v158_v59 = vmax.f32 %v137_v55, 0.0 }
 0x102   :  { %v154_v35 = vpop.f32.mrf.mxu3 }
 0x103   :  { %v155_v36 = vadd.f32 %v154_v35, %v89_v34 }
 0x104   :  { %v139_v37 = vpop.f32.mrf.mxu0 }
 0x105   :  { %v164_v39 = vmax.f32 %v155_v36, 0.0  ;;  %v140_v52 = vadd.f32 %v139_v37, %v64_v50  ;;  %v294_v37 = vld [vmem:[%s624_s5] sm:$0x3] }
 0x106   :  { %v339_v50 = vld [vmem:[%s625_s6] sm:$0xff] }
 0x107   :  { %253 = vmatpush.msra.mxu1 %v164_v39  ;;  %397 = vmatpush.msra.mxu2 %v164_v39  ;;  %v159_v58 = vmax.f32 %v140_v52, 0.0 }
 0x108   :  { %398 = vmatpush.msrb.mxu3 %v164_v39 }
 0x109   :  { %254 = vmatpush.msra.mxu1 %v163_v38  ;;  %399 = vmatpush.msra.mxu2 %v163_v38 }
 0x10a   :  { %400 = vmatpush.msrb.mxu3 %v163_v38 }
 0x10c   :  { %v142_v41 = vpop.f32.mrf.mxu0 }
 0x10d   :  { %v143_v48 = vadd.f32 %v142_v41, %v69_v44  ;;  %v345_v41 = vld [vmem:[%s625_s6 + $0x30] sm:$0xff] }
 0x10f   :  { %v160_v56 = vmax.f32 %v143_v48, 0.0  ;;  %v341_v48 = vld [vmem:[%s625_s6 + $0x10] sm:$0xff] }
 0x114   :  { %v145_v42 = vpop.f32.mrf.mxu0 }
 0x115   :  { %v146_v46 = vadd.f32 %v145_v42, %v74_v40  ;;  %v346_v40 = vld [vmem:[%s625_s6 + $0x38] sm:$0xff] }
 0x117   :  { %v161_v53 = vmax.f32 %v146_v46, 0.0  ;;  %v343_v46 = vld [vmem:[%s625_s6 + $0x20] sm:$0xff] }
 0x11c   :  { %v148_v45 = vpop.f32.mrf.mxu0 }
 0x11d   :  { %v149_v47 = vadd.f32 %v148_v45, %v79_v43  ;;  %v344_v45 = vld [vmem:[%s625_s6 + $0x28] sm:$0xff] }
 0x11f   :  { %v162_v49 = vmax.f32 %v149_v47, 0.0  ;;  %v342_v47 = vld [vmem:[%s625_s6 + $0x18] sm:$0xff] }
 0x121   :  { %255 = vmatpush.msra.mxu1 %v162_v49  ;;  %401 = vmatpush.msra.mxu2 %v162_v49 }
 0x122   :  { %402 = vmatpush.msrb.mxu3 %v162_v49  ;;  %v340_v49 = vld [vmem:[%s625_s6 + $0x8] sm:$0xff] }
 0x123   :  { %256 = vmatpush.msra.mxu1 %v161_v53  ;;  %403 = vmatpush.msra.mxu2 %v161_v53 }
 0x124   :  { %404 = vmatpush.msrb.mxu3 %v161_v53 }
 0x125   :  { %257 = vmatpush.msra.mxu1 %v160_v56  ;;  %405 = vmatpush.msra.mxu2 %v160_v56 }
 0x126   :  { %406 = vmatpush.msrb.mxu3 %v160_v56 }
 0x127   :  { %258 = vmatpush.msra.mxu1 %v159_v58  ;;  %407 = vmatpush.msra.mxu2 %v159_v58 }
 0x128   :  { %408 = vmatpush.msrb.mxu3 %v159_v58 }
 0x129   :  { %259 = vmatpush.msra.mxu1 %v158_v59  ;;  %409 = vmatpush.msra.mxu2 %v158_v59 }
 0x12a   :  { %410 = vmatpush.msrb.mxu3 %v158_v59 }
 0x12b   :  { %260 = vmatpush.msra.mxu1 %v157_v60  ;;  %411 = vmatpush.msra.mxu2 %v157_v60 }
 0x12c   :  { %412 = vmatpush.msrb.mxu3 %v157_v60  ;;  %386 = vmatmul.msk.f32.vlgmr.msra.gmra.mxu1 %vm33_vm0, %v165_v61 }
 0x12d   :  { %390 = vmatmul.msk.f32.vlgmr.msra.gmra.mxu2 %vm33_vm0, %v169_v62  ;;  %392 = vmatmul.msk.f32.vlgmr.msrb.gmra.mxu3 %vm33_vm0, %v171_v63 }
 0x12e   :  { %358 = vmatpush.msra.mxu3 %v346_v40 }
 0x130   :  { %359 = vmatpush.msra.mxu3 %v345_v41 }
 0x132   :  { %360 = vmatpush.msra.mxu3 %v344_v45 }
 0x134   :  { %387 = vmatmul.msk.f32.gmra.mxu1 %vm33_vm0, %v166_v0  ;;  %361 = vmatpush.msra.mxu3 %v343_v46 }
 0x135   :  { %391 = vmatmul.msk.f32.gmra.mxu2 %vm33_vm0, %v170_v1  ;;  %393 = vmatmul.msk.f32.gmra.mxu3 %vm33_vm0, %v172_v2 }
 0x136   :  { %362 = vmatpush.msra.mxu3 %v342_v47 }
 0x138   :  { %363 = vmatpush.msra.mxu3 %v341_v48 }
 0x13a   :  { %364 = vmatpush.msra.mxu3 %v340_v49 }
 0x13c   :  { %388 = vmatmul.msk.f32.gmra.mxu1 %vm33_vm0, %v167_v3  ;;  %365 = vmatpush.msra.mxu3 %v339_v50 }
 0x144   :  { %389 = vmatmul.msk.f32.gmra.mxu1 %vm33_vm0, %v168_v4 }
 0x1a9   :  { %v262_v5 = vpop.f32.mrf.mxu1 }
 0x1aa   :  { %v263_v33 = vadd.f32 %v262_v5, %v184_v32 }
 0x1ac   :  { %v286_v36 = vmax.f32 %v263_v33, 0.0 }
 0x1b0   :  { %v274_v7 = vpop.f32.mrf.mxu2  ;;  %v280_v8 = vpop.f32.mrf.mxu3 }
 0x1b1   :  { %v265_v10 = vpop.f32.mrf.mxu1  ;;  %v281_v15 = vadd.f32 %v280_v8, %v214_v9  ;;  %v275_v21 = vadd.f32 %v274_v7, %v204_v14 }
 0x1b2   :  { %v266_v30 = vadd.f32 %v265_v10, %v189_v29 }
 0x1b3   :  { %v292_v22 = vmax.f32 %v281_v15, 0.0  ;;  %v290_v25 = vmax.f32 %v275_v21, 0.0 }
 0x1b4   :  { %v287_v35 = vmax.f32 %v266_v30, 0.0 }
 0x1b8   :  { %v277_v12 = vpop.f32.mrf.mxu2  ;;  %v283_v13 = vpop.f32.mrf.mxu3 }
 0x1b9   :  { %v284_v16 = vadd.f32 %v283_v13, %v219_v6  ;;  %v268_v17 = vpop.f32.mrf.mxu1  ;;  %v278_v19 = vadd.f32 %v277_v12, %v209_v11 }
 0x1ba   :  { %v269_v27 = vadd.f32 %v268_v17, %v194_v24 }
 0x1bb   :  { %v293_v20 = vmax.f32 %v284_v16, 0.0  ;;  %v291_v23 = vmax.f32 %v278_v19, 0.0 }
 0x1bc   :  { %v288_v34 = vmax.f32 %v269_v27, 0.0 }
 0x1bd   :  { %306 = vmatpush.msrb.mxu2 %v293_v20 }
 0x1bf   :  { %307 = vmatpush.msrb.mxu2 %v292_v22 }
 0x1c1   :  { %308 = vmatpush.msrb.mxu2 %v291_v23  ;;  %v271_v26 = vpop.f32.mrf.mxu1 }
 0x1c2   :  { %v272_v28 = vadd.f32 %v271_v26, %v199_v18 }
 0x1c3   :  { %309 = vmatpush.msrb.mxu2 %v290_v25 }
 0x1c4   :  { %v289_v31 = vmax.f32 %v272_v28, 0.0 }
 0x1c6   :  { %310 = vmatpush.msrb.mxu2 %v289_v31 }
 0x1c8   :  { %311 = vmatpush.msrb.mxu2 %v288_v34 }
 0x1ca   :  { %312 = vmatpush.msrb.mxu2 %v287_v35 }
 0x1cc   :  { %313 = vmatpush.msrb.mxu2 %v286_v36 }
 0x1cd   :  { %394 = vmatmul.msk.f32.vlgmr.msrb.gmra.mxu2 %vm33_vm0, %v294_v37 }
 0x250   :  { %v315_v38 = vpop.f32.mrf.mxu2 }
 0x251   :  { %v319_v39 = vrot.slane %v315_v38, 6 }
 0x253   :  { %320 = vrot.lane.b32.xlu0 %v319_v39, %s422_s26 }
 0x2c5   :  { %v321_v42 = vpop.permute.xlu0 %320 }
 0x2c6   :  { %v324_v43 = vsel %vm323_vm2, %v315_v38, %v321_v42 }
 0x2c7   :  { %v326_v44 = vsel %vm325_vm3, %v324_v43, -inf }
 0x2c8   :  { %327 = vmax.xlane.f32.xlu1 %v326_v44 }
 0x33b   :  { %v328_v51 = vpop.xlane.xlu1 %327 }
 0x33c   :  { %v329_v52 = vsub.f32 %v324_v43, %v328_v51 }
 0x33e   :  { %v330_v53 = vmul.f32 1.442695, %v329_v52 }
 0x340   :  { %418 = vpow2.f32 %v330_v53 }
 0x346   :  { %v419_v54 = vpop.eup %418 }
 0x347   :  { %395 = vmatmul.msk.f32.vlgmr.msra.gmra.mxu3 %vm33_vm0, %v419_v54  ;;  %v332_v55 = vsel %vm325_vm3, %v419_v54, 0.0 }
 0x348   :  { %333 = vadd.xlane.f32.xlu2 %v332_v55 }
 0x3bb   :  { %v334_v56 = vpop.xlane.xlu2 %333 }
 0x3bc   :  { %420 = vrcp.f32 %v334_v56 }
 0x3c2   :  { %v421_v57 = vpop.eup %420 }
 0x3c3   :  { %v336_v58 = vmul.f32 %v421_v57, %v334_v56 }
 0x3c5   :  { %v337_v59 = vsub.f32 2.0, %v336_v58 }
 0x3c7   :  { %v338_v60 = vmul.f32 %v421_v57, %v337_v59 }
 0x3ca   :  { %v367_v61 = vpop.f32.mrf.mxu3 }
 0x3cb   :  { %v370_v62 = vmul.f32 %v367_v61, %v338_v60 }
 0x3cd   :  { %372 = vst.msk [vmem:[%s626_s7] sm:$0xf] %vm371_vm4, %v370_v62 }

</bundles_post_ra>
